<compile_context>
chip_gen: v7x
topology: tpu7x:2x2x1
jax: 0.10.0
libtpu: 0.0.40
codegen_flags: <defaults>
</compile_context>

<pallas_src>
import jax
import jax.numpy as jnp
import numpy as np
from jax.experimental import pallas as pl
from jax.experimental.pallas import tpu as pltpu

NEG_SLOPE = 0.01   # nn.LeakyReLU default negative_slope
LN_EPS = 1e-5      # nn.LayerNorm default eps


def _round_up(a, m):
    return ((a + m - 1) // m) * m


def fcdropout_kernel(x_ref, wc_ref, bc_ref, wb_ref, bb_ref, g_ref, beta_ref,
                     wo_ref, bo_ref, out_ref):
    # x_ref  : (TILE_M, U*F) f32  raw input rows; cast to compute dtype in-kernel
    # wc_ref : (U*F, W)           folded Linear(F,1)+Flatten+Linear(U,W) weight
    # bc_ref : (1, W) f32         folded bias
    # wb_ref : (NB, W, W); bb_ref/g_ref/beta_ref : (NB, 1, W) f32
    # wo_ref : (W, OUT_PAD); bo_ref : (1, OUT_PAD) f32
    # out_ref: (TILE_M, num_output) f32
    cdtype = wc_ref.dtype

    # Fused stages 1+2+3: one lane-dense MXU matmul, f32 accumulation.
    # The bf16 cast happens here on the VPU instead of as a separate XLA pass over HBM.
    z = jnp.dot(x_ref[...].astype(cdtype), wc_ref[...],
                preferred_element_type=jnp.float32) + bc_ref[...]        # (TILE_M, W) f32

    # Stage 4: num_blocks x (Linear -> LayerNorm -> LeakyReLU), statically unrolled.
    # NOTE: at W=32 the z vregs are only 32/128 lanes full; a 4-row-group lane repack
    # would cut VPU/vreg cost ~4x, but the kernel is HBM-bound so it is deliberately skipped.
    num_blocks = wb_ref.shape[0]
    for i in range(num_blocks):
        z = jnp.dot(z.astype(cdtype), wb_ref[i],
                    preferred_element_type=jnp.float32) + bb_ref[i]
        mean = jnp.mean(z, axis=-1, keepdims=True)
        var = jnp.mean((z - mean) ** 2, axis=-1, keepdims=True)
        inv = jax.lax.rsqrt(var + LN_EPS) * g_ref[i]      # LN scale fused into rsqrt factor
        z = (z - mean) * inv + beta_ref[i]
        z = jnp.where(z > 0, z, NEG_SLOPE * z)            # LeakyReLU

    # Stage 5: Linear(W, num_output).  MXU runs on the 128-lane padded weight; only the
    # true num_output columns are stored (narrow masked store; store slots have slack).
    y = jnp.dot(z.astype(cdtype), wo_ref[...],
                preferred_element_type=jnp.float32) + bo_ref[...]
    out_ref[...] = y[:, :out_ref.shape[-1]]


def fcdropout_forward(x, params, *, compute_dtype=jnp.bfloat16, tile_m=4096):
    """x: (B, T, U, F) float32 -> (B, T, num_output) float32.

    compute_dtype selects the matmul-operand dtype (bf16 is MXU-native on v5e/v6e/v7x);
    accumulation and all elementwise math stay in f32.
    """
    w1, b1, w2, b2, wb, bb, g, beta, wo, bo = params
    B, T, U, F = x.shape
    M = B * T
    UF = U * F
    W = w2.shape[1]
    num_blocks = wb.shape[0]
    num_output = wo.shape[1]
    OUT_PAD = _round_up(num_output, 128)      # lane width for the in-kernel output matmul only

    # ---- fold Linear(F,1) + Flatten + Linear(U,W) into a single (U*F, W) matmul ----
    w_comb = (w1[0][None, :, None] * w2[:, None, :]).reshape(UF, W)       # (U*F, W)
    b_comb = (b1[0, 0] * jnp.sum(w2, axis=0) + b2[0]).reshape(1, W)       # (1, W)

    # ---- lane-pad only the (tiny) output projection weight; the output itself stays narrow ----
    wo_pad = jnp.zeros((W, OUT_PAD), jnp.float32).at[:, :num_output].set(wo)
    bo_pad = jnp.zeros((1, OUT_PAD), jnp.float32).at[:, :num_output].set(bo[0])

    # Matmul operands in compute dtype (tiny one-time casts); biases / LN params stay f32.
    w_comb_c = w_comb.astype(compute_dtype)
    wb_c = wb.astype(compute_dtype)
    wo_pad_c = wo_pad.astype(compute_dtype)

    # ---- row tiling: f32 input/output blocks need a multiple-of-8 second-minor dim ----
    ROW_ALIGN = 8
    if M <= ROW_ALIGN:
        tile = M                                  # single partial block (== full dim: legal)
    else:
        tile = max(ROW_ALIGN,
                   min(_round_up(tile_m, ROW_ALIGN), _round_up(M, ROW_ALIGN)))
        # v7x has 2 TensorCores: make sure the "parallel" row axis has >= 2 grid steps.
        if pl.cdiv(M, tile) < 2:
            tile = _round_up(pl.cdiv(M, 2), ROW_ALIGN)
    grid = (pl.cdiv(M, tile),)

    x2 = x.reshape(M, UF)                         # contiguous view: no copy, no cast, no pad

    const2 = lambda i: (0, 0)
    const3 = lambda i: (0, 0, 0)
    resident = pl.Buffered(1)                     # weights VMEM-resident, single-buffered

    itemsize = jnp.dtype(compute_dtype).itemsize
    weight_bytes = (UF * W + num_blocks * W * W + W * OUT_PAD) * itemsize
    param_bytes = (W + 3 * num_blocks * W + OUT_PAD) * 4
    io_bytes = 2 * tile * (UF + num_output) * 4           # double-buffered x / out blocks
    work_bytes = 4 * tile * max(W, OUT_PAD) * 4           # f32 intermediates headroom
    vmem_limit = int(min(max(2 * (weight_bytes + param_bytes + io_bytes + work_bytes),
                             16 << 20), 48 << 20))        # <=48 MiB fits v7x's 64 MiB VMEM

    cost = pl.CostEstimate(
        flops=2 * M * (UF * W + num_blocks * W * W + W * OUT_PAD),
        transcendentals=M * num_blocks,
        bytes_accessed=M * UF * 4 + M * num_output * 4 + weight_bytes + param_bytes,
    )

    out = pl.pallas_call(
        fcdropout_kernel,
        out_shape=jax.ShapeDtypeStruct((M, num_output), jnp.float32),
        grid=grid,
        in_specs=[
            pl.BlockSpec((tile, UF), lambda i: (i, 0)),                        # x rows (pipelined)
            pl.BlockSpec((UF, W), const2, pipeline_mode=resident),             # folded weight
            pl.BlockSpec((1, W), const2, pipeline_mode=resident),              # folded bias
            pl.BlockSpec((num_blocks, W, W), const3, pipeline_mode=resident),  # block weights
            pl.BlockSpec((num_blocks, 1, W), const3, pipeline_mode=resident),  # block biases
            pl.BlockSpec((num_blocks, 1, W), const3, pipeline_mode=resident),  # LN gamma
            pl.BlockSpec((num_blocks, 1, W), const3, pipeline_mode=resident),  # LN beta
            pl.BlockSpec((W, OUT_PAD), const2, pipeline_mode=resident),        # output weight
            pl.BlockSpec((1, OUT_PAD), const2, pipeline_mode=resident),        # output bias
        ],
        out_specs=pl.BlockSpec((tile, num_output), lambda i: (i, 0)),          # narrow writeback
        compiler_params=pltpu.CompilerParams(
            dimension_semantics=("parallel",),            # shard rows across v7x TCs
            vmem_limit_bytes=vmem_limit,
        ),
        cost_estimate=cost,
    )(x2, w_comb_c, b_comb, wb_c, bb, g, beta, wo_pad_c, bo_pad)

    return out.reshape(B, T, num_output)


def fcdropout_ref(x, params):
    """Pure-JAX reference matching PyTorch FCDropout.forward (f32)."""
    w1, b1, w2, b2, wb, bb, g, beta, wo, bo = params
    h = jnp.sum(x * w1[0], axis=-1) + b1[0, 0]                    # (B,T,U)
    z = h @ w2 + b2[0]                                            # (B,T,W)
    for i in range(wb.shape[0]):
        z = z @ wb[i] + bb[i, 0]
        mean = z.mean(-1, keepdims=True)
        var = ((z - mean) ** 2).mean(-1, keepdims=True)
        z = (z - mean) / jnp.sqrt(var + LN_EPS) * g[i, 0] + beta[i, 0]
        z = jnp.where(z > 0, z, NEG_SLOPE * z)
    return z @ wo + bo[0]


def init_params(key, num_feat, num_uid, num_output, num_blocks, width):
    """Deterministic synthetic parameters, stored in (in, out) layout."""
    ks = jax.random.split(key, 8)
    scale = 0.1
    w1 = scale * jax.random.normal(ks[0], (1, num_feat), jnp.float32)        # Linear(F,1).weight
    b1 = scale * jax.random.normal(ks[1], (1, 1), jnp.float32)
    w2 = scale * jax.random.normal(ks[2], (num_uid, width), jnp.float32)     # Linear(U,W).weight^T
    b2 = scale * jax.random.normal(ks[3], (1, width), jnp.float32)
    wb = scale * jax.random.normal(ks[4], (num_blocks, width, width), jnp.float32)
    bb = scale * jax.random.normal(ks[5], (num_blocks, 1, width), jnp.float32)
    g = jnp.ones((num_blocks, 1, width), jnp.float32)                        # LayerNorm weight
    beta = jnp.zeros((num_blocks, 1, width), jnp.float32)                    # LayerNorm bias
    wo = scale * jax.random.normal(ks[6], (width, num_output), jnp.float32)  # Linear(W,out).weight^T
    bo = scale * jax.random.normal(ks[7], (1, num_output), jnp.float32)
    return (w1, b1, w2, b2, wb, bb, g, beta, wo, bo)


if __name__ == "__main__":
    # Small shapes consistent with the module: time_length=7 is fixed by BaseModel.
    B, T = 2, 7
    num_feat, num_uid, num_output = 4, 8, 3
    num_blocks, width = 2, 32

    key = jax.random.PRNGKey(0)
    kx, kp = jax.random.split(key)
    x = jax.random.normal(kx, (B, T, num_uid, num_feat), jnp.float32)
    params = init_params(kp, num_feat, num_uid, num_output, num_blocks, width)

    ref = fcdropout_ref(x, params)

    # f32 matmul-operand path: tight check.
    out = jax.block_until_ready(fcdropout_forward(x, params, compute_dtype=jnp.float32))
    assert out.shape == (B, T, num_output)
    np.testing.assert_allclose(np.asarray(out), np.asarray(ref), rtol=5e-4, atol=1e-4)

    # Default path: bf16 matmul operands (MXU-native on v5e/v6e/v7x), f32 accumulation.
    out_bf16 = jax.block_until_ready(fcdropout_forward(x, params))
    assert out_bf16.shape == (B, T, num_output)
    np.testing.assert_allclose(np.asarray(out_bf16), np.asarray(ref), rtol=1e-1, atol=1e-1)

    print("KERNEL_OK")
</pallas_src>

<mosaic_0001>
module attributes {stable_mosaic.version = 11 : i64} {
  func.func @fcdropout_kernel(%arg0: i32, %arg1: memref<8x32xf32, #tpu.memory_space<vmem>>, %arg2: memref<32x32xf32, #tpu.memory_space<vmem>>, %arg3: memref<1x32xf32, #tpu.memory_space<vmem>>, %arg4: memref<2x32x32xf32, #tpu.memory_space<vmem>>, %arg5: memref<2x1x32xf32, #tpu.memory_space<vmem>>, %arg6: memref<2x1x32xf32, #tpu.memory_space<vmem>>, %arg7: memref<2x1x32xf32, #tpu.memory_space<vmem>>, %arg8: memref<32x128xf32, #tpu.memory_space<vmem>>, %arg9: memref<1x128xf32, #tpu.memory_space<vmem>>, %arg10: memref<8x3xf32, #tpu.memory_space<vmem>>) attributes {dimension_semantics = [#tpu.dimension_semantics<parallel>], iteration_bounds = array<i64: 2>, scalar_prefetch = 0 : i64, scratch_operands = 0 : i64, tpu.core_type = #tpu.core_type<tc>, window_params = [{transform_indices = @transform_0, window_bounds = array<i64: 8, 32>}, {pipeline_mode = #tpu.pipeline_mode<synchronous>, transform_indices = @transform_1, window_bounds = array<i64: 32, 32>}, {pipeline_mode = #tpu.pipeline_mode<synchronous>, transform_indices = @transform_2, window_bounds = array<i64: 1, 32>}, {pipeline_mode = #tpu.pipeline_mode<synchronous>, transform_indices = @transform_3, window_bounds = array<i64: 2, 32, 32>}, {pipeline_mode = #tpu.pipeline_mode<synchronous>, transform_indices = @transform_4, window_bounds = array<i64: 2, 1, 32>}, {pipeline_mode = #tpu.pipeline_mode<synchronous>, transform_indices = @transform_5, window_bounds = array<i64: 2, 1, 32>}, {pipeline_mode = #tpu.pipeline_mode<synchronous>, transform_indices = @transform_6, window_bounds = array<i64: 2, 1, 32>}, {pipeline_mode = #tpu.pipeline_mode<synchronous>, transform_indices = @transform_7, window_bounds = array<i64: 32, 128>}, {pipeline_mode = #tpu.pipeline_mode<synchronous>, transform_indices = @transform_8, window_bounds = array<i64: 1, 128>}, {transform_indices = @transform_9, window_bounds = array<i64: 8, 3>}]} {
    %c0 = arith.constant 0 : index
    %c0_0 = arith.constant 0 : index
    %0 = vector.load %arg1[%c0, %c0_0] : memref<8x32xf32, #tpu.memory_space<vmem>>, vector<8x32xf32>
    %c0_1 = arith.constant 0 : index
    %c0_2 = arith.constant 0 : index
    %1 = vector.load %arg2[%c0_1, %c0_2] : memref<32x32xf32, #tpu.memory_space<vmem>>, vector<32x32xf32>
    %cst = arith.constant dense<0.000000e+00> : vector<8x32xf32>
    %2 = tpu.matmul %0, %1, %cst {dimension_numbers = #tpu.dot_dimension_numbers<[1], [0], [0], [1], [0, 0, 1, 1], [], []>} : vector<8x32xf32>, vector<32x32xf32>, vector<8x32xf32> -> vector<8x32xf32>
    %c0_3 = arith.constant 0 : index
    %c0_4 = arith.constant 0 : index
    %3 = vector.load %arg3[%c0_3, %c0_4] : memref<1x32xf32, #tpu.memory_space<vmem>>, vector<1x32xf32>
    %4 = vector.broadcast %3 : vector<1x32xf32> to vector<8x32xf32>
    %5 = arith.addf %2, %4 : vector<8x32xf32>
    %c0_5 = arith.constant 0 : index
    %c0_6 = arith.constant 0 : index
    %c0_7 = arith.constant 0 : index
    %6 = vector.load %arg4[%c0_5, %c0_6, %c0_7] : memref<2x32x32xf32, #tpu.memory_space<vmem>>, vector<1x32x32xf32>
    %7 = vector.shape_cast %6 : vector<1x32x32xf32> to vector<32x32xf32>
    %cst_8 = arith.constant dense<0.000000e+00> : vector<8x32xf32>
    %8 = tpu.matmul %5, %7, %cst_8 {dimension_numbers = #tpu.dot_dimension_numbers<[1], [0], [0], [1], [0, 0, 1, 1], [], []>} : vector<8x32xf32>, vector<32x32xf32>, vector<8x32xf32> -> vector<8x32xf32>
    %c0_9 = arith.constant 0 : index
    %c0_10 = arith.constant 0 : index
    %c0_11 = arith.constant 0 : index
    %9 = vector.load %arg5[%c0_9, %c0_10, %c0_11] : memref<2x1x32xf32, #tpu.memory_space<vmem>>, vector<1x1x32xf32>
    %10 = vector.shape_cast %9 : vector<1x1x32xf32> to vector<1x32xf32>
    %11 = vector.broadcast %10 : vector<1x32xf32> to vector<8x32xf32>
    %12 = arith.addf %8, %11 : vector<8x32xf32>
    %cst_12 = arith.constant dense<0.000000e+00> : vector<8xf32>
    %13 = vector.multi_reduction <add>, %12, %cst_12 [1] : vector<8x32xf32> to vector<8xf32>
    %14 = vector.shape_cast %13 : vector<8xf32> to vector<8x1xf32>
    %cst_13 = arith.constant 3.200000e+01 : f32
    %15 = vector.broadcast %cst_13 : f32 to vector<8x1xf32>
    %16 = arith.divf %14, %15 : vector<8x1xf32>
    %17 = vector.broadcast %16 : vector<8x1xf32> to vector<8x32xf32>
    %18 = arith.subf %12, %17 : vector<8x32xf32>
    %19 = arith.mulf %18, %18 : vector<8x32xf32>
    %cst_14 = arith.constant dense<0.000000e+00> : vector<8xf32>
    %20 = vector.multi_reduction <add>, %19, %cst_14 [1] : vector<8x32xf32> to vector<8xf32>
    %21 = vector.shape_cast %20 : vector<8xf32> to vector<8x1xf32>
    %cst_15 = arith.constant 3.200000e+01 : f32
    %22 = vector.broadcast %cst_15 : f32 to vector<8x1xf32>
    %23 = arith.divf %21, %22 : vector<8x1xf32>
    %cst_16 = arith.constant 9.99999974E-6 : f32
    %24 = vector.broadcast %cst_16 : f32 to vector<8x1xf32>
    %25 = arith.addf %23, %24 : vector<8x1xf32>
    %26 = math.rsqrt %25 : vector<8x1xf32>
    %c0_17 = arith.constant 0 : index
    %c0_18 = arith.constant 0 : index
    %c0_19 = arith.constant 0 : index
    %27 = vector.load %arg6[%c0_17, %c0_18, %c0_19] : memref<2x1x32xf32, #tpu.memory_space<vmem>>, vector<1x1x32xf32>
    %28 = vector.shape_cast %27 : vector<1x1x32xf32> to vector<1x32xf32>
    %29 = vector.broadcast %26 : vector<8x1xf32> to vector<8x32xf32>
    %30 = vector.broadcast %28 : vector<1x32xf32> to vector<8x32xf32>
    %31 = arith.mulf %29, %30 : vector<8x32xf32>
    %32 = vector.broadcast %16 : vector<8x1xf32> to vector<8x32xf32>
    %33 = arith.subf %12, %32 : vector<8x32xf32>
    %34 = arith.mulf %33, %31 : vector<8x32xf32>
    %c0_20 = arith.constant 0 : index
    %c0_21 = arith.constant 0 : index
    %c0_22 = arith.constant 0 : index
    %35 = vector.load %arg7[%c0_20, %c0_21, %c0_22] : memref<2x1x32xf32, #tpu.memory_space<vmem>>, vector<1x1x32xf32>
    %36 = vector.shape_cast %35 : vector<1x1x32xf32> to vector<1x32xf32>
    %37 = vector.broadcast %36 : vector<1x32xf32> to vector<8x32xf32>
    %38 = arith.addf %34, %37 : vector<8x32xf32>
    %cst_23 = arith.constant 0.000000e+00 : f32
    %39 = vector.broadcast %cst_23 : f32 to vector<8x32xf32>
    %40 = arith.cmpf ogt, %38, %39 : vector<8x32xf32>
    %cst_24 = arith.constant 0.00999999977 : f32
    %41 = vector.broadcast %cst_24 : f32 to vector<8x32xf32>
    %42 = arith.mulf %41, %38 : vector<8x32xf32>
    %43 = arith.select %40, %38, %42 : vector<8x32xi1>, vector<8x32xf32>
    %c1 = arith.constant 1 : index
    %c0_25 = arith.constant 0 : index
    %c0_26 = arith.constant 0 : index
    %44 = vector.load %arg4[%c1, %c0_25, %c0_26] : memref<2x32x32xf32, #tpu.memory_space<vmem>>, vector<1x32x32xf32>
    %45 = vector.shape_cast %44 : vector<1x32x32xf32> to vector<32x32xf32>
    %cst_27 = arith.constant dense<0.000000e+00> : vector<8x32xf32>
    %46 = tpu.matmul %43, %45, %cst_27 {dimension_numbers = #tpu.dot_dimension_numbers<[1], [0], [0], [1], [0, 0, 1, 1], [], []>} : vector<8x32xf32>, vector<32x32xf32>, vector<8x32xf32> -> vector<8x32xf32>
    %c1_28 = arith.constant 1 : index
    %c0_29 = arith.constant 0 : index
    %c0_30 = arith.constant 0 : index
    %47 = vector.load %arg5[%c1_28, %c0_29, %c0_30] : memref<2x1x32xf32, #tpu.memory_space<vmem>>, vector<1x1x32xf32>
    %48 = vector.shape_cast %47 : vector<1x1x32xf32> to vector<1x32xf32>
    %49 = vector.broadcast %48 : vector<1x32xf32> to vector<8x32xf32>
    %50 = arith.addf %46, %49 : vector<8x32xf32>
    %cst_31 = arith.constant dense<0.000000e+00> : vector<8xf32>
    %51 = vector.multi_reduction <add>, %50, %cst_31 [1] : vector<8x32xf32> to vector<8xf32>
    %52 = vector.shape_cast %51 : vector<8xf32> to vector<8x1xf32>
    %cst_32 = arith.constant 3.200000e+01 : f32
    %53 = vector.broadcast %cst_32 : f32 to vector<8x1xf32>
    %54 = arith.divf %52, %53 : vector<8x1xf32>
    %55 = vector.broadcast %54 : vector<8x1xf32> to vector<8x32xf32>
    %56 = arith.subf %50, %55 : vector<8x32xf32>
    %57 = arith.mulf %56, %56 : vector<8x32xf32>
    %cst_33 = arith.constant dense<0.000000e+00> : vector<8xf32>
    %58 = vector.multi_reduction <add>, %57, %cst_33 [1] : vector<8x32xf32> to vector<8xf32>
    %59 = vector.shape_cast %58 : vector<8xf32> to vector<8x1xf32>
    %cst_34 = arith.constant 3.200000e+01 : f32
    %60 = vector.broadcast %cst_34 : f32 to vector<8x1xf32>
    %61 = arith.divf %59, %60 : vector<8x1xf32>
    %cst_35 = arith.constant 9.99999974E-6 : f32
    %62 = vector.broadcast %cst_35 : f32 to vector<8x1xf32>
    %63 = arith.addf %61, %62 : vector<8x1xf32>
    %64 = math.rsqrt %63 : vector<8x1xf32>
    %c1_36 = arith.constant 1 : index
    %c0_37 = arith.constant 0 : index
    %c0_38 = arith.constant 0 : index
    %65 = vector.load %arg6[%c1_36, %c0_37, %c0_38] : memref<2x1x32xf32, #tpu.memory_space<vmem>>, vector<1x1x32xf32>
    %66 = vector.shape_cast %65 : vector<1x1x32xf32> to vector<1x32xf32>
    %67 = vector.broadcast %64 : vector<8x1xf32> to vector<8x32xf32>
    %68 = vector.broadcast %66 : vector<1x32xf32> to vector<8x32xf32>
    %69 = arith.mulf %67, %68 : vector<8x32xf32>
    %70 = vector.broadcast %54 : vector<8x1xf32> to vector<8x32xf32>
    %71 = arith.subf %50, %70 : vector<8x32xf32>
    %72 = arith.mulf %71, %69 : vector<8x32xf32>
    %c1_39 = arith.constant 1 : index
    %c0_40 = arith.constant 0 : index
    %c0_41 = arith.constant 0 : index
    %73 = vector.load %arg7[%c1_39, %c0_40, %c0_41] : memref<2x1x32xf32, #tpu.memory_space<vmem>>, vector<1x1x32xf32>
    %74 = vector.shape_cast %73 : vector<1x1x32xf32> to vector<1x32xf32>
    %75 = vector.broadcast %74 : vector<1x32xf32> to vector<8x32xf32>
    %76 = arith.addf %72, %75 : vector<8x32xf32>
    %cst_42 = arith.constant 0.000000e+00 : f32
    %77 = vector.broadcast %cst_42 : f32 to vector<8x32xf32>
    %78 = arith.cmpf ogt, %76, %77 : vector<8x32xf32>
    %cst_43 = arith.constant 0.00999999977 : f32
    %79 = vector.broadcast %cst_43 : f32 to vector<8x32xf32>
    %80 = arith.mulf %79, %76 : vector<8x32xf32>
    %81 = arith.select %78, %76, %80 : vector<8x32xi1>, vector<8x32xf32>
    %c0_44 = arith.constant 0 : index
    %c0_45 = arith.constant 0 : index
    %82 = vector.load %arg8[%c0_44, %c0_45] : memref<32x128xf32, #tpu.memory_space<vmem>>, vector<32x128xf32>
    %cst_46 = arith.constant dense<0.000000e+00> : vector<8x128xf32>
    %83 = tpu.matmul %81, %82, %cst_46 {dimension_numbers = #tpu.dot_dimension_numbers<[1], [0], [0], [1], [0, 0, 1, 1], [], []>} : vector<8x32xf32>, vector<32x128xf32>, vector<8x128xf32> -> vector<8x128xf32>
    %c0_47 = arith.constant 0 : index
    %c0_48 = arith.constant 0 : index
    %84 = vector.load %arg9[%c0_47, %c0_48] : memref<1x128xf32, #tpu.memory_space<vmem>>, vector<1x128xf32>
    %85 = vector.broadcast %84 : vector<1x128xf32> to vector<8x128xf32>
    %86 = arith.addf %83, %85 : vector<8x128xf32>
    %87 = vector.extract_strided_slice %86 {offsets = [0, 0], sizes = [8, 3], strides = [1, 1]} : vector<8x128xf32> to vector<8x3xf32>
    %c0_49 = arith.constant 0 : index
    %c0_50 = arith.constant 0 : index
    %88 = vector.load %arg10[%c0_49, %c0_50] : memref<8x3xf32, #tpu.memory_space<vmem>>, vector<8x3xf32>
    tpu.vector_store %arg10[%c0_49, %c0_50], %87 {strides = array<i32>} : memref<8x3xf32, #tpu.memory_space<vmem>>, vector<8x3xf32>,
    return
  }
  func.func @transform_0(%arg0: i32) -> (i32, i32) {
    %c0_i32 = arith.constant 0 : i32
    %c0_i32_0 = arith.constant 0 : i32
    return %arg0, %c0_i32 : i32, i32
  }
  func.func @transform_1(%arg0: i32) -> (i32, i32) {
    %c0_i32 = arith.constant 0 : i32
    %c0_i32_0 = arith.constant 0 : i32
    %c0_i32_1 = arith.constant 0 : i32
    return %c0_i32, %c0_i32_0 : i32, i32
  }
  func.func @transform_2(%arg0: i32) -> (i32, i32) {
    %c0_i32 = arith.constant 0 : i32
    %c0_i32_0 = arith.constant 0 : i32
    %c0_i32_1 = arith.constant 0 : i32
    return %c0_i32, %c0_i32_0 : i32, i32
  }
  func.func @transform_3(%arg0: i32) -> (i32, i32, i32) {
    %c0_i32 = arith.constant 0 : i32
    %c0_i32_0 = arith.constant 0 : i32
    %c0_i32_1 = arith.constant 0 : i32
    %c0_i32_2 = arith.constant 0 : i32
    return %c0_i32, %c0_i32_0, %c0_i32_1 : i32, i32, i32
  }
  func.func @transform_4(%arg0: i32) -> (i32, i32, i32) {
    %c0_i32 = arith.constant 0 : i32
    %c0_i32_0 = arith.constant 0 : i32
    %c0_i32_1 = arith.constant 0 : i32
    %c0_i32_2 = arith.constant 0 : i32
    return %c0_i32, %c0_i32_0, %c0_i32_1 : i32, i32, i32
  }
  func.func @transform_5(%arg0: i32) -> (i32, i32, i32) {
    %c0_i32 = arith.constant 0 : i32
    %c0_i32_0 = arith.constant 0 : i32
    %c0_i32_1 = arith.constant 0 : i32
    %c0_i32_2 = arith.constant 0 : i32
    return %c0_i32, %c0_i32_0, %c0_i32_1 : i32, i32, i32
  }
  func.func @transform_6(%arg0: i32) -> (i32, i32, i32) {
    %c0_i32 = arith.constant 0 : i32
    %c0_i32_0 = arith.constant 0 : i32
    %c0_i32_1 = arith.constant 0 : i32
    %c0_i32_2 = arith.constant 0 : i32
    return %c0_i32, %c0_i32_0, %c0_i32_1 : i32, i32, i32
  }
  func.func @transform_7(%arg0: i32) -> (i32, i32) {
    %c0_i32 = arith.constant 0 : i32
    %c0_i32_0 = arith.constant 0 : i32
    %c0_i32_1 = arith.constant 0 : i32
    return %c0_i32, %c0_i32_0 : i32, i32
  }
  func.func @transform_8(%arg0: i32) -> (i32, i32) {
    %c0_i32 = arith.constant 0 : i32
    %c0_i32_0 = arith.constant 0 : i32
    %c0_i32_1 = arith.constant 0 : i32
    return %c0_i32, %c0_i32_0 : i32, i32
  }
  func.func @transform_9(%arg0: i32) -> (i32, i32) {
    %c0_i32 = arith.constant 0 : i32
    %c0_i32_0 = arith.constant 0 : i32
    return %arg0, %c0_i32 : i32, i32
  }
}

</mosaic_0001>

<bundles_post_ra>
// kernel: tpu_custom_call.1
= control target key start
LH: loop header
LB: loop body
LE: loop exit
PB: predicated region body
PF: predicated region fallthrough
CT: control target
= control target key end

     0   :  { %s1570_s0 = inlined_call_operand.hbm [shape: f32[14,32], index: 0, kind: input, shape index: {}]   ;;  %s1571_s1 = inlined_call_operand.hbm [shape: f32[32,32], index: 1, kind: input, shape index: {}]   ;;  %s1572_s2 = inlined_call_operand.vmem [shape: f32[1,32], index: 2, kind: input, shape index: {}]   ;;  %s1573_s3 = inlined_call_operand.hbm [shape: f32[2,32,32], index: 3, kind: input, shape index: {}]   ;;  %s1574_s4 = inlined_call_operand.vmem [shape: f32[2,1,32], index: 4, kind: input, shape index: {}]   ;;  %s1575_s5 = inlined_call_operand.vmem [shape: f32[2,1,32], index: 5, kind: input, shape index: {}]   ;;  %s1576_s6 = inlined_call_operand.vmem [shape: f32[2,1,32], index: 6, kind: input, shape index: {}]   ;;  %s1577_s7 = inlined_call_operand.hbm [shape: f32[32,128], index: 7, kind: input, shape index: {}]   ;;  %s1578_s8 = inlined_call_operand.vmem [shape: f32[1,128], index: 8, kind: input, shape index: {}]   ;;  %s1579_s9 = inlined_call_operand.vmem [shape: f32[14,3], index: 9, kind: output, shape index: {}]  }
   0x1   :  { %1583 = sst [smem:[#allocation12_spill]] %s1579_s9 }
   0x2   :  { %14 = vsyncpa [#allocation3], 0 }
   0x3   :  { %16 = vsyncpa [#allocation3 + $0x1], 0 }
   0x4   :  { %17 = vsyncpa [#allocation5], 0 }
   0x5   :  { %18 = vsyncpa [#allocation8], 0  ;;  %s1310_s30 = smov 0   ;;  %s1312_s10 = smov 0  }
   0x6   :  { %s1314_s11 = smov 0   ;;  %s1316_s12 = smov 0  }
   0x7 LB: > { %s1329_s13 = sadd.s32 4294967295, %s1249_s12   ;;  %p44_p0 = scmp.ne.s32.totalorder %s1241_s10, %s1237_s30  ;;  %s1249_s12 = sphi %s1316_s12, %s1599_s12   ;;  %s1245_s11 = sphi %s1314_s11, %s1598_s11   ;;  %s1241_s10 = sphi %s1312_s10, %s1597_s10   ;;  %s1237_s30 = sphi %s1310_s30, %s1596_s30  }
   0x8   : > { %p1580_p1 = scmp.eq.s32.totalorder %s1329_s13, 0  ;;  %p896_p2 = scmp.ge.s32.totalorder %s1249_s12, 1 }
   0x9   : > { %p249_p3 = scmp.lt.s32.totalorder %s1249_s12, 3  ;;  %s1251_s16 = smov [#allocation4]  }
   0xa   : > { %p1337_p4 = por %p1580_p1, %p44_p0  ;;  %s261_s17 = sshll.u32 %s1251_s16, 4  ;;  %s1345_s17 = int_to_ptr.vmem [resolvable:$true] %s261_s17 }
   0xb   : > { %p1341_p5 = pnand %p896_p2, %p249_p3  ;;  %s1252_s19 = smov [#allocation6]  }
   0xc   : > { %s1584_s14 = scalar_select %p1337_p4, 1, 0 }
   0xd   : > { %s1585_s15 = scalar_select %p1341_p5, 1, 0 }
   0xe   : > { %p1028_p6 = pneg %p1341_p5  ;;  %s277_s20 = sshll.u32 %s1252_s19, 4  ;;  %s1355_s20 = int_to_ptr.vmem [resolvable:$true] %s277_s20 }
   0xf   : > { %s1253_s21 = smov [#allocation7]   ;;  %s1093_s25 = scalar_lea.hbm %s1571_s1, 512 }
  0x10   : > { %p1351_p7 = pnand %p1028_p6, %p1580_p1  ;;  %s1357_s22 = sshll.u32 %s1253_s21, 4  ;;  %s300_s22 = int_to_ptr.vmem [resolvable:$true] %s1357_s22 }
  0x11   : > { %p1094_p8 = scmp.ne.s32.totalorder %s1571_s1, %s1093_s25  ;;  %p1100_p12 = scmp.lt.u32.totalorder %s1093_s25, %s1571_s1 }
  0x12   : > { %p1367_p9 = pneg %p1351_p7 }
  0x14   : > { %p1096_p10 = pnand %p1367_p9, %p1094_p8 }
  0x16   : > { %p1097_p11 = pneg %p1096_p10 }
  0x18   : > { %p1102_p13 = pnand %p1100_p12, %p1097_p11 }
  0x1a   : > { %1105 = shalt.err (!%p1102_p13)
}
  0x1b   : > { %s1106_s16 = scalar_lea.vmem %s1345_s17, 512  ;;  %p1114_p6 = scmp.lt.s32.totalorder %s1345_s17, %s1345_s17 }
  0x1c   : > { %p1107_p0 = scmp.ne.s32.totalorder %s1345_s17, %s1106_s16  ;;  %p1115_p1 = scmp.lt.s32.totalorder %s1106_s16, %s1106_s16 }
  0x1e   : > { %p1109_p2 = pnand %p1107_p0, %p1367_p9  ;;  %p1116_p8 = por %p1115_p1, %p1114_p6 }
  0x20   : > { %p1110_p3 = pneg %p1109_p2 }
  0x22   : > { %p1117_p10 = pnand %p1116_p8, %p1110_p3 }
  0x24   : > { %1120 = shalt.err (!%p1117_p10)
}
  0x25   : > { %s1254_s19 = smov 128   ;;  %s1255_s21 = smov 8  }
  0x26   : > { %1031 = dma.hbm_to_vmem [thread:$0]  (!%p1351_p7), %s1571_s1, 512, %s1345_s17, [#allocation5], %s1254_s19, %s1254_s19, %s1255_s21  }
  0x27   : > { %s1121_s27 = scalar_lea.hbm %s1573_s3, 1024 }
  0x28   : > { %p1122_p1 = scmp.ne.s32.totalorder %s1573_s3, %s1121_s27  ;;  %p1128_p13 = scmp.lt.u32.totalorder %s1121_s27, %s1573_s3 }
  0x2a   : > { %p1124_p11 = pnand %p1122_p1, %p1367_p9 }
  0x2c   : > { %p1125_p12 = pneg %p1124_p11 }
  0x2e   : > { %p1130_p0 = pnand %p1128_p13, %p1125_p12 }
  0x30   : > { %1133 = shalt.err (!%p1130_p0)
}
  0x31   : > { %s1134_s17 = scalar_lea.vmem %s1355_s20, 1024  ;;  %p1142_p8 = scmp.lt.s32.totalorder %s1355_s20, %s1355_s20 }
  0x32   : > { %p1135_p2 = scmp.ne.s32.totalorder %s1355_s20, %s1134_s17  ;;  %p1143_p10 = scmp.lt.s32.totalorder %s1134_s17, %s1134_s17 }
  0x34   : > { %p1137_p3 = pnand %p1135_p2, %p1367_p9  ;;  %p1144_p1 = por %p1143_p10, %p1142_p8 }
  0x36   : > { %p1138_p6 = pneg %p1137_p3 }
  0x38   : > { %p1145_p11 = pnand %p1144_p1, %p1138_p6 }
  0x3a   : > { %1148 = shalt.err (!%p1145_p11)
}
  0x3b   : > { %1034 = dma.hbm_to_vmem [thread:$0]  (!%p1351_p7), %s1573_s3, 1024, %s1355_s20, [#allocation5], %s1254_s19, %s1254_s19, %s1255_s21  }
  0x3c   : > { %s1149_s26 = scalar_lea.hbm %s1577_s7, 512 }
  0x3d   : > { %p1150_p12 = scmp.ne.s32.totalorder %s1577_s7, %s1149_s26  ;;  %p1156_p2 = scmp.lt.u32.totalorder %s1149_s26, %s1577_s7 }
  0x3f   : > { %p1152_p13 = pnand %p1150_p12, %p1367_p9 }
  0x41   : > { %p1153_p0 = pneg %p1152_p13 }
  0x43   : > { %p1158_p3 = pnand %p1156_p2, %p1153_p0 }
  0x45   : > { %1161 = shalt.err (!%p1158_p3)
}
  0x46   : > { %s1162_s17 = scalar_lea.vmem %s300_s22, 512  ;;  %p1170_p1 = scmp.lt.s32.totalorder %s300_s22, %s300_s22 }
  0x47   : > { %p1163_p6 = scmp.ne.s32.totalorder %s300_s22, %s1162_s17  ;;  %p1171_p11 = scmp.lt.s32.totalorder %s1162_s17, %s1162_s17 }
  0x49   : > { %p1165_p8 = pnand %p1163_p6, %p1367_p9  ;;  %p1172_p4 = por %p1171_p11, %p1170_p1 }
  0x4b   : > { %p1166_p10 = pneg %p1165_p8 }
  0x4d   : > { %p1173_p5 = pnand %p1172_p4, %p1166_p10 }
  0x4f   : > { %1176 = shalt.err (!%p1173_p5)
}
  0x50   : > { %1037 = dma.hbm_to_vmem [thread:$0]  (!%p1351_p7), %s1577_s7, 512, %s300_s22, [#allocation8], %s1254_s19, %s1254_s19, %s1255_s21  }
  0x51   : > { %s1440_s28 = sadd.s32 1, %s1249_s12   ;;  %s31_s23 = sadd.s32 1, %s1245_s11 }
  0x52   : > { %s28_s18 = ssub.s32 %s1249_s12, %s1440_s28  ;;  %p38_p5 = scmp.ne.s32.totalorder %s1245_s11, %s1241_s10 }
  0x53   : > { %p29_p4 = scmp.eq.s32.totalorder %s28_s18, 0  ;;  %p39_p9 = scmp.eq.s32.totalorder %s1249_s12, 0 }
  0x54   : > { %p1045_p12 = scmp.lt.s32.totalorder %s1249_s12, 2  ;;  %s316_s25 = sand.u32 1, %s1245_s11  }
  0x55   : > { %s1450_s24 = scalar_select %p29_p4, %s1245_s11, %s31_s23  }
  0x56   : > { %p40_p13 = por %p39_p9, %p38_p5  ;;  %s901_s26 = sshll.u32 %s316_s25, 3 }
  0x57   : > { %s902_s27 = sshll.u32 %s1249_s12, 7  ;;  %s320_s22 = scalar_lea.vmem [#allocation2], %s901_s26 }
  0x58   : > { %s1457_s16 = scalar_lea.hbm %s1570_s0, %s902_s27  ;;  %s327_s19 = sshll.u32 %s320_s22, 4  ;;  %s1459_s19 = int_to_ptr.vmem [resolvable:$true] %s327_s19 }
  0x59   : > { %p1461_p7 = pnand %p1045_p12, %p40_p13  ;;  %s317_s12 = scalar_lea.sflag [#allocation3], %s316_s25 }
  0x5a   : > { %s1177_s17 = scalar_lea.hbm %s1457_s16, 128  ;;  %s1182_s18 = scalar_lea.hbm %s1570_s0, 256 }
  0x5b   : > { %p1178_p0 = scmp.ne.s32.totalorder %s1457_s16, %s1177_s17  ;;  %p1179_p2 = pneg %p1461_p7 }
  0x5c   : > { %p1183_p8 = scmp.lt.u32.totalorder %s1457_s16, %s1570_s0  ;;  %p1184_p10 = scmp.lt.u32.totalorder %s1182_s18, %s1177_s17 }
  0x5d   : > { %p1180_p3 = pnand %p1179_p2, %p1178_p0  ;;  %p1186_p11 = scmp.lt.u32.totalorder %s1177_s17, %s1457_s16 }
  0x5e   : > { %p1185_p1 = por %p1184_p10, %p1183_p8 }
  0x5f   : > { %p1181_p6 = pneg %p1180_p3 }
  0x60   : > { %p1187_p4 = por %p1186_p11, %p1185_p1 }
  0x62   : > { %p1188_p5 = pnand %p1187_p4, %p1181_p6 }
  0x64   : > { %1191 = shalt.err (!%p1188_p5)
}
  0x65   : > { %s1192_s25 = scalar_lea.vmem %s1459_s19, 128  ;;  %s1256_s27 = smov [#allocation2]  }
  0x66   : > { %p1193_p9 = scmp.ne.s32.totalorder %s1459_s19, %s1192_s25  ;;  %s1197_s29 = sshll.u32 %s1256_s27, 4  ;;  %s1198_s29 = int_to_ptr.vmem [resolvable:$false] %s1197_s29 }
  0x67   : > { %s1199_s30 = scalar_lea.vmem %s1198_s29, 256  ;;  %p1200_p0 = scmp.lt.s32.totalorder %s1459_s19, %s1198_s29 }
  0x68   : > { %p1195_p12 = pnand %p1193_p9, %p1179_p2  ;;  %p1201_p3 = scmp.lt.s32.totalorder %s1199_s30, %s1192_s25 }
  0x6a   : > { %p1196_p13 = pneg %p1195_p12  ;;  %p1202_p8 = por %p1201_p3, %p1200_p0 }
  0x6c   : > { %p1203_p10 = pnand %p1202_p8, %p1196_p13 }
  0x6e   : > { %1206 = shalt.err (!%p1203_p10)
}
  0x6f   : > { %1041 = dma.hbm_to_vmem [thread:$0]  (!%p1461_p7), %s1457_s16, 128, %s1459_s19, %s317_s12  }
  0x70   : > { %p1589_p6 = scmp.ne.s32.totalorder %s1585_s15, 0 }
  0x71   : > { %s338_s22 = sand.u32 (!%p1589_p6), 1, %s1241_s10   ;;  %p1590_p2 = scmp.ne.s32.totalorder (!%p1589_p6), %s1584_s14, 0 }
  0x72   : > { %336 = sbr.rel (%p1589_p6) target bundleno = 1627 (0x65b), region = 56  ;;  %s1493_s17 = sshll.u32 (!%p1589_p6), %s338_s22, 3 }
  0x73   : > { %s339_s20 = scalar_lea.sflag (!%p1589_p6), [#allocation3], %s338_s22  ;;  %s342_s9 = scalar_lea.vmem (!%p1589_p6), [#allocation2], %s1493_s17 }
  0x79   : > { %1224 = dma.done.wait (%p1590_p2), %s339_s20, 128  }
  0x7a   : > { %1226 = vsyncadd (%p1590_p2), %s339_s20, 4294967168  ;;  %p1591_p1 = scmp.eq.s32.totalorder %s1329_s13, 0 }
  0x7c   : > { %1228 = dma.done.wait (%p1591_p1), [#allocation5], 1536   ;;  %p1592_p7 = pmov %p1591_p1 }
  0x7d   : > { %p1593_p11 = pmov %p1591_p1 }
  0x7e   : > { %1230 = vsyncadd (%p1592_p7), [#allocation5], 4294965760 }
  0x7f   : > { %1232 = dma.done.wait (%p1593_p11), [#allocation8], 512   ;;  %p1594_p4 = pmov %p1591_p1 }
  0x80   : > { %v1257_v0 = vmov 0.0|0.0   ;;  %vm1258_vm0 = vmmov 0   ;;  %v1259_v1 = vmov 0.0   ;;  %v393_v2 = vld [vmem:[#allocation4] sm:$0xff]  ;;  %v394_v3 = vld [vmem:[#allocation4 + $0x8] sm:$0xff]  ;;  %v395_v4 = vld [vmem:[#allocation4 + $0x10] sm:$0xff] }
  0x81   : > { %1234 = vsyncadd (%p1594_p4), [#allocation8], 4294966784  ;;  %990 = vmatprep.subr.bf16.mxu0 %v1257_v0  ;;  %954 = vmatprep.mubr.msk.f32.mxu0 %vm1258_vm0, %v1259_v1  ;;  %v991_v5 = vpack.c.bf16 %v394_v3, %v393_v2  ;;  %v396_v6 = vld [vmem:[#allocation4 + $0x18] sm:$0xff]  ;;  %v478_v7 = vld [vmem:[#allocation6] sm:$0xff]  ;;  %vm404_vm1 = vcmask 261120   ;;  %p388_p5 = scmp.lt.s32.totalorder %s1329_s13, 1 }
  0x82   : > { %996 = vmatprep.subr.bf16.mxu1 %v1257_v0  ;;  %965 = vmatprep.mubr.msk.f32.mxu1 %vm1258_vm0, %v1259_v1  ;;  %v479_v8 = vld [vmem:[#allocation6 + $0x8] sm:$0xff]  ;;  %v994_v9 = vpack.c.bf16 %v396_v6, %v395_v4  ;;  %v392_v11 = vld [vmem:[%s342_s9] sm:$0xff]  ;;  %v909_v15 = vld [vmem:[%s1572_s2] ss:$0 sm:$0xff]  ;;  %s1595_s16 = sld [smem:[#allocation12_spill]]  ;;  %vm799_vm4 = vcmask 23552  }
  0x83   : > { %992 = vmatpush3.bf16.msra.mxu0 %v991_v5  ;;  %v997_v10 = vpack.c.bf16 %v479_v8, %v478_v7  ;;  %v480_v12 = vld [vmem:[#allocation6 + $0x10] sm:$0xff]  ;;  %v481_v13 = vld [vmem:[#allocation6 + $0x18] sm:$0xff]  ;;  %v911_v19 = vld [vmem:[%s1574_s4] ss:$0 sm:$0xff]  ;;  %s1601_s13 = smov (!%p388_p5, %s1329_s13), 1 }
  0x84   : > { %993 = vmatprep.subr.bf16.mxu0 %v1257_v0  ;;  %v1000_v14 = vpack.c.bf16 %v481_v13, %v480_v12  ;;  %v596_v29 = vld [vmem:[#allocation6 + $0x20] sm:$0xff]  ;;  %v597_v30 = vld [vmem:[#allocation6 + $0x28] sm:$0xff]  ;;  %v598_v32 = vld [vmem:[#allocation6 + $0x30] sm:$0xff]  ;;  %s908_s17 = sshll.u32 %s1601_s13, 3 }
  0x85   : > { %998 = vmatpush3.bf16.msra.mxu1 %v997_v10  ;;  %v1003_v31 = vpack.c.bf16 %v597_v30, %v596_v29  ;;  %v599_v33 = vld [vmem:[#allocation6 + $0x38] sm:$0xff]  ;;  %v913_v38 = vld [vmem:[%s1575_s5] ss:$0 sm:$0xff]  ;;  %v916_v46 = vld [vmem:[%s1574_s4 + $0x1] ss:$0 sm:$0xff] }
  0x86   : > { %999 = vmatprep.subr.bf16.mxu1 %v1257_v0  ;;  %v1006_v34 = vpack.c.bf16 %v599_v33, %v598_v32  ;;  %v914_v41 = vld [vmem:[%s1576_s6] ss:$0 sm:$0xff]  ;;  %v716_v57 = vld [vmem:[#allocation7 + $0x8] sm:$0xff]  ;;  %v717_v59 = vld [vmem:[#allocation7 + $0x10] sm:$0xff] }
  0x87   : > { %995 = vmatpush3.bf16.msra.mxu0 %v994_v9  ;;  %v715_v56 = vld [vmem:[#allocation7] sm:$0xff]  ;;  %v718_v60 = vld [vmem:[#allocation7 + $0x18] sm:$0xff] }
  0x88   : > { %1002 = vmatprep.subr.bf16.mxu0 %v1257_v0  ;;  %v1009_v58 = vpack.c.bf16 %v716_v57, %v715_v56  ;;  %v1012_v61 = vpack.c.bf16 %v718_v60, %v717_v59  ;;  %v919_v2 = vld [vmem:[%s1575_s5 + $0x1] ss:$0 sm:$0xff]  ;;  %v922_v9 = vld [vmem:[%s1578_s8] ss:$0 sm:$0xff]  ;;  %s391_s19 = scalar_lea.vmem %s1595_s16, %s908_s17 }
  0x89   : > { %1001 = vmatpush3.bf16.msra.mxu1 %v1000_v14  ;;  %v921_v5 = vld [vmem:[%s1576_s6 + $0x1] ss:$0 sm:$0xff] }
  0x8a   : > { %955 = vmatmul.mubr.msk.f32.vlgmr.msra.gmra.mrb[0].mxu0 %vm404_vm1, %v392_v11  ;;  %1008 = vmatprep.subr.bf16.mxu1 %v1257_v0 }
  0x8b   : > { %976 = vmatprep.mubr.msk.f32.mxu0 %vm1258_vm0, %v1259_v1  ;;  %1004 = vmatpush3.bf16.msra.mxu0 %v1003_v31 }
  0x8c   : > { %1005 = vmatprep.subr.bf16.mxu0 %v1257_v0 }
  0x8f   : > { %1007 = vmatpush3.bf16.msra.mxu0 %v1006_v34 }
 0x15d   : > { %v474_v16 = vpop.f32.mrb[0].mxu0 }
 0x15e   : > { %v475_v17 = vadd.f32 %v909_v15, %v474_v16  ;;  %v956_v18 = vpop.f32.mrb[1].mxu0 }
 0x160   : > { %966 = vmatmul.mubr.msk.f32.vlgmr.msra.gmra.mrb[0].mxu1 %vm404_vm1, %v475_v17 }
 0x161   : > { %987 = vmatprep.mubr.msk.f32.mxu1 %vm1258_vm0, %v1259_v1  ;;  %1010 = vmatpush3.bf16.msra.mxu1 %v1009_v58 }
 0x162   : > { %1011 = vmatprep.subr.bf16.mxu1 %v1257_v0 }
 0x165   : > { %1013 = vmatpush3.bf16.msra.mxu1 %v1012_v61 }
 0x233   : > { %v558_v20 = vpop.f32.mrb[0].mxu1 }
 0x234   : > { %v559_v21 = vadd.f32 %v911_v19, %v558_v20  ;;  %v967_v22 = vpop.f32.mrb[1].mxu1 }
 0x236   : > { %v562_v23 = vsel %vm404_vm1, %v559_v21, 0.0 }
 0x237   : > { %563 = vadd.xlane.f32.xlu0 %v562_v23 }
 0x2c4   : > { %v564_v24 = vpop.xlane.xlu0 %563 }
 0x2c5   : > { %v566_v25 = vmul.f32 0.03125, %v564_v24 }
 0x2c7   : > { %v567_v26 = vsub.f32 %v559_v21, %v566_v25 }
 0x2c9   : > { %v568_v27 = vmul.f32 %v567_v26, %v567_v26 }
 0x2cb   : > { %v569_v28 = vsel %vm404_vm1, %v568_v27, 0.0 }
 0x2cc   : > { %570 = vadd.xlane.f32.xlu0 %v569_v28 }
 0x359   : > { %v571_v35 = vpop.xlane.xlu0 %570 }
 0x35a   : > { %v572_v36 = vmul.f32 0.03125, %v571_v35 }
 0x35c   : > { %v573_v37 = vadd.f32 1e-05, %v572_v36 }
 0x35e   : > { %1089 = vrsqrt.f32 %v573_v37 }
 0x368   : > { %v1090_v39 = vpop.eup %1089 }
 0x369   : > { %v582_v40 = vmul.f32 %v1090_v39, %v913_v38 }
 0x36b   : > { %v583_v42 = vmul.f32 %v582_v40, %v567_v26 }
 0x36d   : > { %v591_v43 = vadd.f32 %v914_v41, %v583_v42 }
 0x36f   : > { %vm592_vm2 = vcmp.gt.f32.partialorder %v591_v43, 0.0  ;;  %v593_v44 = vmul.f32 0.01, %v591_v43 }
 0x371   : > { %v594_v45 = vsel %vm592_vm2, %v591_v43, %v593_v44 }
 0x372   : > { %977 = vmatmul.mubr.msk.f32.vlgmr.msra.gmra.mrb[2].mxu0 %vm404_vm1, %v594_v45 }
 0x445   : > { %v677_v47 = vpop.f32.mrb[2].mxu0 }
 0x446   : > { %v678_v48 = vadd.f32 %v916_v46, %v677_v47  ;;  %v978_v49 = vpop.f32.mrb[3].mxu0 }
 0x448   : > { %v681_v50 = vsel %vm404_vm1, %v678_v48, 0.0 }
 0x449   : > { %682 = vadd.xlane.f32.xlu1 %v681_v50 }
 0x4d6   : > { %v683_v51 = vpop.xlane.xlu1 %682 }
 0x4d7   : > { %v684_v52 = vmul.f32 0.03125, %v683_v51 }
 0x4d9   : > { %v685_v53 = vsub.f32 %v678_v48, %v684_v52 }
 0x4db   : > { %v686_v54 = vmul.f32 %v685_v53, %v685_v53 }
 0x4dd   : > { %v687_v55 = vsel %vm404_vm1, %v686_v54, 0.0 }
 0x4de   : > { %688 = vadd.xlane.f32.xlu1 %v687_v55 }
 0x56b   : > { %v689_v62 = vpop.xlane.xlu1 %688 }
 0x56c   : > { %v690_v63 = vmul.f32 0.03125, %v689_v62 }
 0x56e   : > { %v691_v1 = vadd.f32 1e-05, %v690_v63 }
 0x570   : > { %1091 = vrsqrt.f32 %v691_v1 }
 0x57a   : > { %v1092_v3 = vpop.eup %1091 }
 0x57b   : > { %v701_v4 = vmul.f32 %v1092_v3, %v919_v2 }
 0x57d   : > { %v702_v6 = vmul.f32 %v701_v4, %v685_v53 }
 0x57f   : > { %v711_v7 = vadd.f32 %v921_v5, %v702_v6 }
 0x581   : > { %vm712_vm3 = vcmp.gt.f32.partialorder %v711_v7, 0.0  ;;  %v713_v0 = vmul.f32 0.01, %v711_v7 }
 0x583   : > { %v714_v8 = vsel %vm712_vm3, %v711_v7, %v713_v0 }
 0x584   : > { %988 = vmatmul.mubr.msk.f32.vlgmr.msra.gmra.mrb[2].mxu1 %vm404_vm1, %v714_v8 }
 0x657   : > { %v795_v10 = vpop.f32.mrb[2].mxu1 }
 0x658   : > { %v796_v11 = vadd.f32 %v922_v9, %v795_v10  ;;  %v989_v12 = vpop.f32.mrb[3].mxu1 }
 0x65a   : > { %800 = vst.msk [vmem:[%s391_s19] sm:$0xff] %vm799_vm4, %v796_v11 }
 0x65b PF: > { %p21_p9 = scmp.ge.s32.totalorder %s1440_s28, 4   ;;  %s1596_s30 = smov %s1241_s10 }
 0x65c   : > { %s1597_s10 = smov %s1245_s11  ;;  %s1598_s11 = smov %s1450_s24 }
 0x65d   : > { %s1599_s12 = smov %s1440_s28  ;;  %23 = sbr.rel (!%p21_p9) target bundleno = 7 (0x7), region = 112 }
 0x664   :  { %820 = vsyncpa [#allocation3], 1 }
 0x665   :  { %822 = vsyncpa [#allocation3 + $0x1], 1 }
 0x666   :  { %823 = vsyncpa [#allocation5], 1 }
 0x667   :  { %824 = vsyncpa [#allocation8], 1 }

</bundles_post_ra>
